<compile_context>
chip_gen: v7x
topology: tpu7x:2x2x1
jax: 0.10.0
libtpu: 0.0.40
codegen_flags: <defaults>
</compile_context>

<pallas_src>
import math

import jax
import jax.numpy as jnp
from jax.experimental import pallas as pl
from jax.experimental.pallas import tpu as pltpu


def _make_kernel(C):
    inv_c = 1.0 / C  # compile-time constant

    def kernel(x_ref, w1_ref, b1_ref, w2_ref, b2_ref, g_ref, out_ref):
        x = x_ref[...]        # (B, L)
        g = g_ref[...]        # (P*C, P*C) block-diag ones: per-pixel channel reducer

        # ---- stage 1: ZeroPad2d + EqualizedConv2d(L, C, (H,W)) fused into one matmul ----
        h = jnp.dot(x, w1_ref[...], preferred_element_type=jnp.float32) + b1_ref[...]
        h = jnp.where(h > 0, h, 0.2 * h)                                   # LeakyReLU(0.2)
        ss = jnp.dot(h * h, g, preferred_element_type=jnp.float32)         # per-pixel sum_c h^2
        h = h * jax.lax.rsqrt(ss * inv_c + 1e-8)                           # AudioNorm

        # ---- stage 2: EqualizedConv2d(C, C, 3, padding=1) as one dense matmul ----
        z = jnp.dot(h, w2_ref[...], preferred_element_type=jnp.float32) + b2_ref[...]
        z = jnp.where(z > 0, z, 0.2 * z)                                   # LeakyReLU(0.2)
        ss2 = jnp.dot(z * z, g, preferred_element_type=jnp.float32)
        z = z * jax.lax.rsqrt(ss2 * inv_c + 1e-8)                          # AudioNorm

        out_ref[...] = z      # single full, unmasked, lane-dense store (B, P*C)

    return kernel


def gansynth_init_format_layer(x, w1, b1, w2, b2, output_shape):
    """x: (B, dimLatent) f32 -> (B, scaleDepth, H, W) f32 (NCHW, like PyTorch)."""
    B, L = x.shape
    C = w1.shape[0]
    H, W = output_shape
    P = H * W

    c1 = math.sqrt(2.0 / (L * H * W))   # He constant of conv1 (fan_in = L*H*W)
    c2 = math.sqrt(2.0 / (C * 3 * 3))   # He constant of conv2 (fan_in = C*9)

    # ---- wrapper-side weight prep (layout plumbing; precompute once in real use) ----
    # stage-1: padded input has a single non-zero pixel, so the (H,W) conv is an
    # outer product with the spatially-flipped kernel -> fuse to (L, P*C).
    #   w1f[l, (i*W+j)*C + o] = c1 * w1[o, l, H-1-i, W-1-j]
    w1f = (c1 * w1[:, :, ::-1, ::-1]).transpose(1, 2, 3, 0).reshape(L, P * C)
    b1t = jnp.tile(c1 * b1, P).reshape(1, P * C)

    # stage-2: 3x3 conv with padding=1 over the H x W map as a dense (P*C, P*C) matrix.
    #   w2big[p*C+ci, q*C+co] = c2 * w2[co, ci, i-i'+1, j-j'+1]  if |i-i'|<=1 and |j-j'|<=1
    pix = jnp.arange(P)
    pi, pj = pix // W, pix % W
    di = pi[:, None] - pi[None, :] + 1            # (P, P) input-row minus output-row + 1
    dj = pj[:, None] - pj[None, :] + 1
    valid = ((di >= 0) & (di <= 2) & (dj >= 0) & (dj <= 2)).astype(w2.dtype)
    w2t = w2.transpose(2, 3, 1, 0)                # (3, 3, Cin, Cout)
    blocks = w2t[jnp.clip(di, 0, 2), jnp.clip(dj, 0, 2)]      # (P, P, Cin, Cout)
    blocks = blocks * valid[:, :, None, None]
    w2big = (c2 * blocks).transpose(0, 2, 1, 3).reshape(P * C, P * C)
    b2t = jnp.tile(c2 * b2, P).reshape(1, P * C)

    # block-diagonal ones matrix: per-pixel channel sum (for both AudioNorms)
    g = jnp.kron(jnp.eye(P, dtype=jnp.float32), jnp.ones((C, C), jnp.float32))

    kernel = _make_kernel(C)
    out_flat = pl.pallas_call(
        kernel,
        out_shape=jax.ShapeDtypeStruct((B, P * C), jnp.float32),
        in_specs=[pl.BlockSpec(memory_space=pltpu.MemorySpace.VMEM)] * 6,
        out_specs=pl.BlockSpec(memory_space=pltpu.MemorySpace.VMEM),
    )(x, w1f, b1t, w2big, b2t, g)

    # glue: (B, H*W*C) -> NHWC -> PyTorch NCHW
    return jnp.transpose(out_flat.reshape(B, H, W, C), (0, 3, 1, 2))


def reference(x, w1, b1, w2, b2, output_shape):
    """Pure-JAX replica of the PyTorch forward (for verification)."""
    H, W = output_shape
    B, L = x.shape
    C = w1.shape[0]
    c1 = math.sqrt(2.0 / (L * H * W))
    c2 = math.sqrt(2.0 / (C * 9))
    lrelu = lambda v: jnp.where(v > 0, v, 0.2 * v)
    anorm = lambda v: v / jnp.sqrt(jnp.mean(v * v, axis=1, keepdims=True) + 1e-8)

    # ZeroPad2d + conv((H,W)) on a 1x1 input == outer product with flipped kernel
    y = c1 * (jnp.einsum('bl,olij->boij', x, w1[:, :, ::-1, ::-1],
                         precision=jax.lax.Precision.HIGHEST)
              + b1[None, :, None, None])
    y = anorm(lrelu(y))

    z = jax.lax.conv_general_dilated(
        y, w2, window_strides=(1, 1), padding=((1, 1), (1, 1)),
        dimension_numbers=('NCHW', 'OIHW', 'NCHW'),
        precision=jax.lax.Precision.HIGHEST)
    z = c2 * (z + b2[None, :, None, None])
    return anorm(lrelu(z))


if __name__ == "__main__":
    key = jax.random.PRNGKey(0)
    B, dimLatent, scaleDepth = 2, 32, 16
    outputShape = (2, 4)   # (H, W) of the initial GANSynth feature map

    kx, k1, k2 = jax.random.split(key, 3)
    x = jax.random.normal(kx, (B, dimLatent), jnp.float32)
    # ConstrainedLayer init (equalized=True, lrMul=1.0): weight ~ N(0, 1), bias = 0
    w1 = jax.random.normal(k1, (scaleDepth, dimLatent) + outputShape, jnp.float32)
    b1 = jnp.zeros((scaleDepth,), jnp.float32)
    w2 = jax.random.normal(k2, (scaleDepth, scaleDepth, 3, 3), jnp.float32)
    b2 = jnp.zeros((scaleDepth,), jnp.float32)

    out = gansynth_init_format_layer(x, w1, b1, w2, b2, outputShape)
    out = jax.block_until_ready(out)

    ref = reference(x, w1, b1, w2, b2, outputShape)
    assert out.shape == ref.shape == (B, scaleDepth, outputShape[0], outputShape[1])
    err = float(jnp.max(jnp.abs(out - ref)))
    if err > 5e-2:
        raise AssertionError(f"kernel/reference mismatch, max abs diff = {err}")
    print("KERNEL_OK")
</pallas_src>

<mosaic_0001>
module attributes {stable_mosaic.version = 11 : i64} {
  func.func @kernel(%arg0: memref<2x32xf32, #tpu.memory_space<vmem>>, %arg1: memref<32x128xf32, #tpu.memory_space<vmem>>, %arg2: memref<1x128xf32, #tpu.memory_space<vmem>>, %arg3: memref<128x128xf32, #tpu.memory_space<vmem>>, %arg4: memref<1x128xf32, #tpu.memory_space<vmem>>, %arg5: memref<128x128xf32, #tpu.memory_space<vmem>>, %arg6: memref<2x128xf32, #tpu.memory_space<vmem>>) attributes {dimension_semantics = [], scalar_prefetch = 0 : i64, scratch_operands = 0 : i64, tpu.core_type = #tpu.core_type<tc>} {
    %c0 = arith.constant 0 : index
    %c0_0 = arith.constant 0 : index
    %0 = vector.load %arg0[%c0, %c0_0] : memref<2x32xf32, #tpu.memory_space<vmem>>, vector<2x32xf32>
    %c0_1 = arith.constant 0 : index
    %c0_2 = arith.constant 0 : index
    %1 = vector.load %arg5[%c0_1, %c0_2] : memref<128x128xf32, #tpu.memory_space<vmem>>, vector<128x128xf32>
    %c0_3 = arith.constant 0 : index
    %c0_4 = arith.constant 0 : index
    %2 = vector.load %arg1[%c0_3, %c0_4] : memref<32x128xf32, #tpu.memory_space<vmem>>, vector<32x128xf32>
    %cst = arith.constant dense<0.000000e+00> : vector<2x128xf32>
    %3 = tpu.matmul %0, %2, %cst {dimension_numbers = #tpu.dot_dimension_numbers<[1], [0], [0], [1], [0, 0, 1, 1], [], []>} : vector<2x32xf32>, vector<32x128xf32>, vector<2x128xf32> -> vector<2x128xf32>
    %c0_5 = arith.constant 0 : index
    %c0_6 = arith.constant 0 : index
    %4 = vector.load %arg2[%c0_5, %c0_6] : memref<1x128xf32, #tpu.memory_space<vmem>>, vector<1x128xf32>
    %5 = vector.broadcast %4 : vector<1x128xf32> to vector<2x128xf32>
    %6 = arith.addf %3, %5 : vector<2x128xf32>
    %cst_7 = arith.constant 0.000000e+00 : f32
    %7 = vector.broadcast %cst_7 : f32 to vector<2x128xf32>
    %8 = arith.cmpf ogt, %6, %7 : vector<2x128xf32>
    %cst_8 = arith.constant 2.000000e-01 : f32
    %9 = vector.broadcast %cst_8 : f32 to vector<2x128xf32>
    %10 = arith.mulf %9, %6 : vector<2x128xf32>
    %11 = arith.select %8, %6, %10 : vector<2x128xi1>, vector<2x128xf32>
    %12 = arith.mulf %11, %11 : vector<2x128xf32>
    %cst_9 = arith.constant dense<0.000000e+00> : vector<2x128xf32>
    %13 = tpu.matmul %12, %1, %cst_9 {dimension_numbers = #tpu.dot_dimension_numbers<[1], [0], [0], [1], [0, 0, 1, 1], [], []>} : vector<2x128xf32>, vector<128x128xf32>, vector<2x128xf32> -> vector<2x128xf32>
    %cst_10 = arith.constant 6.250000e-02 : f32
    %14 = vector.broadcast %cst_10 : f32 to vector<2x128xf32>
    %15 = arith.mulf %13, %14 : vector<2x128xf32>
    %cst_11 = arith.constant 9.99999993E-9 : f32
    %16 = vector.broadcast %cst_11 : f32 to vector<2x128xf32>
    %17 = arith.addf %15, %16 : vector<2x128xf32>
    %18 = math.rsqrt %17 : vector<2x128xf32>
    %19 = arith.mulf %11, %18 : vector<2x128xf32>
    %c0_12 = arith.constant 0 : index
    %c0_13 = arith.constant 0 : index
    %20 = vector.load %arg3[%c0_12, %c0_13] : memref<128x128xf32, #tpu.memory_space<vmem>>, vector<128x128xf32>
    %cst_14 = arith.constant dense<0.000000e+00> : vector<2x128xf32>
    %21 = tpu.matmul %19, %20, %cst_14 {dimension_numbers = #tpu.dot_dimension_numbers<[1], [0], [0], [1], [0, 0, 1, 1], [], []>} : vector<2x128xf32>, vector<128x128xf32>, vector<2x128xf32> -> vector<2x128xf32>
    %c0_15 = arith.constant 0 : index
    %c0_16 = arith.constant 0 : index
    %22 = vector.load %arg4[%c0_15, %c0_16] : memref<1x128xf32, #tpu.memory_space<vmem>>, vector<1x128xf32>
    %23 = vector.broadcast %22 : vector<1x128xf32> to vector<2x128xf32>
    %24 = arith.addf %21, %23 : vector<2x128xf32>
    %cst_17 = arith.constant 0.000000e+00 : f32
    %25 = vector.broadcast %cst_17 : f32 to vector<2x128xf32>
    %26 = arith.cmpf ogt, %24, %25 : vector<2x128xf32>
    %cst_18 = arith.constant 2.000000e-01 : f32
    %27 = vector.broadcast %cst_18 : f32 to vector<2x128xf32>
    %28 = arith.mulf %27, %24 : vector<2x128xf32>
    %29 = arith.select %26, %24, %28 : vector<2x128xi1>, vector<2x128xf32>
    %30 = arith.mulf %29, %29 : vector<2x128xf32>
    %cst_19 = arith.constant dense<0.000000e+00> : vector<2x128xf32>
    %31 = tpu.matmul %30, %1, %cst_19 {dimension_numbers = #tpu.dot_dimension_numbers<[1], [0], [0], [1], [0, 0, 1, 1], [], []>} : vector<2x128xf32>, vector<128x128xf32>, vector<2x128xf32> -> vector<2x128xf32>
    %cst_20 = arith.constant 6.250000e-02 : f32
    %32 = vector.broadcast %cst_20 : f32 to vector<2x128xf32>
    %33 = arith.mulf %31, %32 : vector<2x128xf32>
    %cst_21 = arith.constant 9.99999993E-9 : f32
    %34 = vector.broadcast %cst_21 : f32 to vector<2x128xf32>
    %35 = arith.addf %33, %34 : vector<2x128xf32>
    %36 = math.rsqrt %35 : vector<2x128xf32>
    %37 = arith.mulf %29, %36 : vector<2x128xf32>
    %c0_22 = arith.constant 0 : index
    %c0_23 = arith.constant 0 : index
    %38 = vector.load %arg6[%c0_22, %c0_23] : memref<2x128xf32, #tpu.memory_space<vmem>>, vector<2x128xf32>
    tpu.vector_store %arg6[%c0_22, %c0_23], %37 {strides = array<i32>} : memref<2x128xf32, #tpu.memory_space<vmem>>, vector<2x128xf32>,
    return
  }
}

</mosaic_0001>

<bundles_post_ra>
// kernel: tpu_custom_call.1
= control target key start
LH: loop header
LB: loop body
LE: loop exit
PB: predicated region body
PF: predicated region fallthrough
CT: control target
= control target key end

     0   :  { %11 = vsyncpa [#allocation3], 0  ;;  %s997_s0 = inlined_call_operand.hbm [shape: f32[2,32], index: 0, kind: input, shape index: {}]   ;;  %s998_s1 = inlined_call_operand.hbm [shape: f32[32,128], index: 1, kind: input, shape index: {}]   ;;  %s999_s2 = inlined_call_operand.vmem [shape: f32[1,128], index: 2, kind: input, shape index: {}]   ;;  %s1000_s3 = inlined_call_operand.hbm [shape: f32[128,128], index: 3, kind: input, shape index: {}]   ;;  %s1001_s4 = inlined_call_operand.vmem [shape: f32[1,128], index: 4, kind: input, shape index: {}]   ;;  %s1002_s5 = inlined_call_operand.hbm [shape: f32[128,128], index: 5, kind: input, shape index: {}]   ;;  %s1003_s6 = inlined_call_operand.hbm [shape: f32[2,128], index: 6, kind: output, shape index: {}]  }
   0x1   :  { %12 = vsyncpa [#allocation6], 0 }
   0x2   :  { %13 = vsyncpa [#allocation9], 0 }
   0x3   :  { %14 = vsyncpa [#allocation4], 0  ;;  %s831_s21 = smov [#allocation5]   ;;  %s713_s25 = scalar_lea.hbm %s998_s1, 512 }
   0x4   :  { %s30_s22 = sshll.u32 %s831_s21, 4  ;;  %p714_p0 = scmp.ne.s32.totalorder %s998_s1, %s713_s25  ;;  %s31_s22 = int_to_ptr.vmem [resolvable:$true] %s30_s22 }
   0x5   :  { %p717_p1 = scmp.lt.u32.totalorder %s713_s25, %s998_s1 }
   0x7   :  { %p719_p2 = pnand %p717_p1, %p714_p0 }
   0x9   :  { %722 = shalt.err (!%p719_p2)
}
   0xa   :  { %s723_s30 = scalar_lea.vmem %s31_s22, 512  ;;  %p728_p4 = scmp.lt.s32.totalorder %s31_s22, %s31_s22 }
   0xb   :  { %p724_p3 = scmp.ne.s32.totalorder %s31_s22, %s723_s30  ;;  %p729_p5 = scmp.lt.s32.totalorder %s723_s30, %s723_s30 }
   0xd   :  { %p730_p6 = por %p729_p5, %p728_p4 }
   0xf   :  { %p731_p7 = pnand %p730_p6, %p724_p3 }
  0x11   :  { %734 = shalt.err (!%p731_p7)
}
  0x12   :  { %s832_s7 = smov 128   ;;  %s833_s8 = smov 8  }
  0x13   :  { %36 = dma.hbm_to_vmem [thread:$0]  %s998_s1, 512, %s31_s22, [#allocation6], %s832_s7, %s832_s7, %s833_s8  }
  0x14   :  { %s834_s11 = smov [#allocation2]   ;;  %s835_s13 = smov [#allocation7]  }
  0x15   :  { %s21_s12 = sshll.u32 %s834_s11, 4  ;;  %s44_s14 = sshll.u32 %s835_s13, 4  ;;  %s22_s12 = int_to_ptr.vmem [resolvable:$true] %s21_s12  ;;  %s45_s14 = int_to_ptr.vmem [resolvable:$true] %s44_s14 }
  0x16   :  { %s735_s17 = scalar_lea.hbm %s997_s0, 32 }
  0x17   :  { %p736_p8 = scmp.ne.s32.totalorder %s997_s0, %s735_s17  ;;  %p739_p9 = scmp.lt.u32.totalorder %s735_s17, %s997_s0 }
  0x19   :  { %p741_p10 = pnand %p739_p9, %p736_p8 }
  0x1b   :  { %744 = shalt.err (!%p741_p10)
}
  0x1c   :  { %s745_s1 = scalar_lea.vmem %s22_s12, 32  ;;  %p750_p12 = scmp.lt.s32.totalorder %s22_s12, %s22_s12 }
  0x1d   :  { %p746_p11 = scmp.ne.s32.totalorder %s22_s12, %s745_s1  ;;  %p751_p13 = scmp.lt.s32.totalorder %s745_s1, %s745_s1 }
  0x1f   :  { %p752_p0 = por %p751_p13, %p750_p12 }
  0x21   :  { %p753_p1 = pnand %p752_p0, %p746_p11 }
  0x23   :  { %756 = shalt.err (!%p753_p1)
}
  0x24   :  { %24 = dma.hbm_to_vmem [thread:$0]  %s997_s0, 32, %s22_s12, [#allocation3]  }
  0x25   :  { %s757_s26 = scalar_lea.hbm %s1000_s3, 2048 }
  0x26   :  { %p758_p2 = scmp.ne.s32.totalorder %s1000_s3, %s757_s26  ;;  %p761_p3 = scmp.lt.u32.totalorder %s757_s26, %s1000_s3 }
  0x28   :  { %p763_p4 = pnand %p761_p3, %p758_p2 }
  0x2a   :  { %766 = shalt.err (!%p763_p4)
}
  0x2b   :  { %s767_s9 = scalar_lea.vmem %s45_s14, 2048  ;;  %p772_p6 = scmp.lt.s32.totalorder %s45_s14, %s45_s14 }
  0x2c   :  { %p768_p5 = scmp.ne.s32.totalorder %s45_s14, %s767_s9  ;;  %p773_p7 = scmp.lt.s32.totalorder %s767_s9, %s767_s9 }
  0x2e   :  { %p774_p8 = por %p773_p7, %p772_p6 }
  0x30   :  { %p775_p9 = pnand %p774_p8, %p768_p5 }
  0x32   :  { %778 = shalt.err (!%p775_p9)
}
  0x33   :  { %50 = dma.hbm_to_vmem [thread:$0]  %s1000_s3, 2048, %s45_s14, [#allocation6], %s832_s7, %s832_s7, %s833_s8  }
  0x34   :  { %s836_s11 = smov [#allocation8]   ;;  %s779_s16 = scalar_lea.hbm %s1002_s5, 2048 }
  0x35   :  { %s58_s12 = sshll.u32 %s836_s11, 4  ;;  %p780_p10 = scmp.ne.s32.totalorder %s1002_s5, %s779_s16  ;;  %s59_s12 = int_to_ptr.vmem [resolvable:$true] %s58_s12 }
  0x36   :  { %p783_p11 = scmp.lt.u32.totalorder %s779_s16, %s1002_s5 }
  0x38   :  { %p785_p12 = pnand %p783_p11, %p780_p10 }
  0x3a   :  { %788 = shalt.err (!%p785_p12)
}
  0x3b   :  { %s789_s21 = scalar_lea.vmem %s59_s12, 2048  ;;  %p794_p0 = scmp.lt.s32.totalorder %s59_s12, %s59_s12 }
  0x3c   :  { %p790_p13 = scmp.ne.s32.totalorder %s59_s12, %s789_s21  ;;  %p795_p1 = scmp.lt.s32.totalorder %s789_s21, %s789_s21 }
  0x3e   :  { %p796_p2 = por %p795_p1, %p794_p0 }
  0x40   :  { %p797_p3 = pnand %p796_p2, %p790_p13 }
  0x42   :  { %800 = shalt.err (!%p797_p3)
}
  0x43   :  { %64 = dma.hbm_to_vmem [thread:$0]  %s1002_s5, 2048, %s59_s12, [#allocation9], %s832_s7, %s832_s7, %s833_s8  }
  0x44   :  { %823 = dma.done.wait [#allocation3], 32  }
  0x45   :  { %824 = vsyncadd [#allocation3], 4294967264 }
  0x46   :  { %825 = dma.done.wait [#allocation6], 2560  }
  0x47   :  { %826 = vsyncadd [#allocation6], 4294964736 }
  0x48   :  { %827 = dma.done.wait [#allocation9], 2048  }
  0x49   :  { %828 = vsyncadd [#allocation9], 4294965248  ;;  %v837_v0 = vmov 0.0|0.0   ;;  %vm838_vm0 = vmmov 0   ;;  %v839_v1 = vmov 0.0   ;;  %v94_v2 = vld [vmem:[#allocation5] sm:$0xff] }
  0x4a   :  { %621 = vmatprep.subr.bf16.mxu0 %v837_v0  ;;  %513 = vmatprep.mubr.msk.f32.mxu0 %vm838_vm0, %v839_v1  ;;  %v95_v3 = vld [vmem:[#allocation5 + $0x8] sm:$0xff]  ;;  %v96_v4 = vld [vmem:[#allocation5 + $0x10] sm:$0xff]  ;;  %v97_v6 = vld [vmem:[#allocation5 + $0x18] sm:$0xff]  ;;  %vm105_vm1 = vcmask 261120   ;;  %s840_s1 = smov [#allocation10]  }
  0x4b   :  { %627 = vmatprep.subr.bf16.mxu1 %v837_v0  ;;  %548 = vmatprep.mubr.msk.f32.mxu1 %vm838_vm0, %v839_v1  ;;  %v622_v5 = vpack.c.bf16 %v95_v3, %v94_v2  ;;  %v78_v7 = vld [vmem:[#allocation8] sm:$0xff]  ;;  %v79_v8 = vld [vmem:[#allocation8 + $0x8] sm:$0xff]  ;;  %v80_v9 = vld [vmem:[#allocation8 + $0x10] sm:$0xff]  ;;  %v625_v11 = vpack.c.bf16 %v97_v6, %v96_v4  ;;  %s435_s22 = sshll.u32 %s840_s1, 4  ;;  %s436_s22 = int_to_ptr.vmem [resolvable:$true] %s435_s22 }
  0x4c   :  { %v81_v10 = vld [vmem:[#allocation8 + $0x18] sm:$0xff]  ;;  %v939_v12 = vpack.c.bf16 %v79_v8, %v78_v7  ;;  %v82_v14 = vld [vmem:[#allocation8 + $0x20] sm:$0xff]  ;;  %v83_v15 = vld [vmem:[#allocation8 + $0x28] sm:$0xff]  ;;  %p806_p5 = scmp.lt.s32.totalorder %s436_s22, %s436_s22 }
  0x4d   :  { %623 = vmatpush3.bf16.msra.mxu0 %v622_v5  ;;  %v943_v13 = vpack.c.bf16 %v81_v10, %v80_v9  ;;  %v77_v16 = vld [vmem:[#allocation2] sm:$0x3]  ;;  %v948_v17 = vpack.c.bf16 %v83_v15, %v82_v14  ;;  %v84_v18 = vld [vmem:[#allocation8 + $0x30] sm:$0xff]  ;;  %v86_v21 = vld [vmem:[#allocation8 + $0x40] sm:$0xff] }
  0x4e   :  { %624 = vmatprep.subr.bf16.mxu0 %v837_v0  ;;  %629 = vmatpush3.bf16.msra.mxu1 %v939_v12  ;;  %v85_v19 = vld [vmem:[#allocation8 + $0x38] sm:$0xff]  ;;  %v87_v22 = vld [vmem:[#allocation8 + $0x48] sm:$0xff]  ;;  %v88_v24 = vld [vmem:[#allocation8 + $0x50] sm:$0xff] }
  0x4f   :  { %630 = vmatprep.subr.bf16.mxu1 %v837_v0  ;;  %v637_v20 = vpack.c.bf16 %v85_v19, %v84_v18  ;;  %v640_v23 = vpack.c.bf16 %v87_v22, %v86_v21  ;;  %v89_v25 = vld [vmem:[#allocation8 + $0x58] sm:$0xff]  ;;  %v90_v27 = vld [vmem:[#allocation8 + $0x60] sm:$0xff]  ;;  %v91_v28 = vld [vmem:[#allocation8 + $0x68] sm:$0xff] }
  0x50   :  { %v643_v26 = vpack.c.bf16 %v89_v25, %v88_v24  ;;  %v646_v29 = vpack.c.bf16 %v91_v28, %v90_v27  ;;  %v92_v30 = vld [vmem:[#allocation8 + $0x70] sm:$0xff]  ;;  %v93_v31 = vld [vmem:[#allocation8 + $0x78] sm:$0xff]  ;;  %v257_v33 = vld [vmem:[#allocation7] sm:$0xff] }
  0x51   :  { %626 = vmatpush3.bf16.msra.mxu0 %v625_v11  ;;  %v649_v32 = vpack.c.bf16 %v93_v31, %v92_v30  ;;  %v258_v34 = vld [vmem:[#allocation7 + $0x8] sm:$0xff]  ;;  %v259_v35 = vld [vmem:[#allocation7 + $0x10] sm:$0xff]  ;;  %v260_v37 = vld [vmem:[#allocation7 + $0x18] sm:$0xff] }
  0x52   :  { %651 = vmatprep.subr.bf16.mxu0 %v837_v0  ;;  %632 = vmatpush3.bf16.msra.mxu1 %v943_v13  ;;  %v652_v36 = vpack.c.bf16 %v258_v34, %v257_v33  ;;  %v655_v38 = vpack.c.bf16 %v260_v37, %v259_v35  ;;  %v261_v39 = vld [vmem:[#allocation7 + $0x20] sm:$0xff]  ;;  %v262_v40 = vld [vmem:[#allocation7 + $0x28] sm:$0xff]  ;;  %v263_v42 = vld [vmem:[#allocation7 + $0x30] sm:$0xff] }
  0x53   :  { %633 = vmatprep.subr.bf16.mxu1 %v837_v0  ;;  %v658_v41 = vpack.c.bf16 %v262_v40, %v261_v39  ;;  %v264_v43 = vld [vmem:[#allocation7 + $0x38] sm:$0xff]  ;;  %v265_v52 = vld [vmem:[#allocation7 + $0x40] sm:$0xff]  ;;  %v266_v53 = vld [vmem:[#allocation7 + $0x48] sm:$0xff] }
  0x54   :  { %514 = vmatmul.mubr.msk.f32.vlgmr.msra.gmra.mrb[0].mxu0 %vm105_vm1, %v77_v16  ;;  %v661_v44 = vpack.c.bf16 %v264_v43, %v263_v42  ;;  %v446_v45 = vld [vmem:[%s999_s2] ss:$0 sm:$0xff]  ;;  %v664_v54 = vpack.c.bf16 %v266_v53, %v265_v52  ;;  %v267_v55 = vld [vmem:[#allocation7 + $0x50] sm:$0xff]  ;;  %v269_v58 = vld [vmem:[#allocation7 + $0x60] sm:$0xff] }
  0x55   :  { %583 = vmatprep.mubr.msk.f32.mxu0 %vm838_vm0, %v839_v1  ;;  %653 = vmatpush3.bf16.msra.mxu0 %v652_v36  ;;  %v268_v56 = vld [vmem:[#allocation7 + $0x58] sm:$0xff]  ;;  %v270_v59 = vld [vmem:[#allocation7 + $0x68] sm:$0xff]  ;;  %v271_v61 = vld [vmem:[#allocation7 + $0x70] sm:$0xff] }
  0x56   :  { %635 = vmatpush3.bf16.msra.mxu1 %v948_v17  ;;  %654 = vmatprep.subr.bf16.mxu0 %v837_v0  ;;  %v667_v57 = vpack.c.bf16 %v268_v56, %v267_v55  ;;  %v670_v60 = vpack.c.bf16 %v270_v59, %v269_v58  ;;  %v272_v62 = vld [vmem:[#allocation7 + $0x78] sm:$0xff] }
  0x57   :  { %636 = vmatprep.subr.bf16.mxu1 %v837_v0  ;;  %v673_v63 = vpack.c.bf16 %v272_v62, %v271_v61  ;;  %v448_v7 = vld [vmem:[%s1001_s4] ss:$0 sm:$0xff]  ;;  %s801_s4 = scalar_lea.vmem %s436_s22, 32 }
  0x58   :  { %p802_p4 = scmp.ne.s32.totalorder %s436_s22, %s801_s4  ;;  %p807_p6 = scmp.lt.s32.totalorder %s801_s4, %s801_s4 }
  0x59   :  { %656 = vmatpush3.bf16.msra.mxu0 %v655_v38 }
  0x5a   :  { %638 = vmatpush3.bf16.msra.mxu1 %v637_v20  ;;  %657 = vmatprep.subr.bf16.mxu0 %v837_v0  ;;  %p808_p7 = por %p807_p6, %p806_p5 }
  0x5b   :  { %639 = vmatprep.subr.bf16.mxu1 %v837_v0 }
  0x5c   :  { %p809_p8 = pnand %p808_p7, %p802_p4 }
  0x5d   :  { %659 = vmatpush3.bf16.msra.mxu0 %v658_v41 }
  0x5e   :  { %641 = vmatpush3.bf16.msra.mxu1 %v640_v23  ;;  %660 = vmatprep.subr.bf16.mxu0 %v837_v0 }
  0x5f   :  { %642 = vmatprep.subr.bf16.mxu1 %v837_v0 }
  0x61   :  { %662 = vmatpush3.bf16.msra.mxu0 %v661_v44 }
  0x62   :  { %644 = vmatpush3.bf16.msra.mxu1 %v643_v26  ;;  %663 = vmatprep.subr.bf16.mxu0 %v837_v0 }
  0x63   :  { %645 = vmatprep.subr.bf16.mxu1 %v837_v0 }
  0x65   :  { %665 = vmatpush3.bf16.msra.mxu0 %v664_v54 }
  0x66   :  { %647 = vmatpush3.bf16.msra.mxu1 %v646_v29  ;;  %666 = vmatprep.subr.bf16.mxu0 %v837_v0 }
  0x67   :  { %648 = vmatprep.subr.bf16.mxu1 %v837_v0 }
  0x69   :  { %668 = vmatpush3.bf16.msra.mxu0 %v667_v57 }
  0x6a   :  { %650 = vmatpush3.bf16.msra.mxu1 %v649_v32  ;;  %669 = vmatprep.subr.bf16.mxu0 %v837_v0 }
  0x6b   :  { %675 = vmatprep.subr.bf16.mxu1 %v837_v0 }
  0x6d   :  { %671 = vmatpush3.bf16.msra.mxu0 %v670_v60 }
  0x6e   :  { %672 = vmatprep.subr.bf16.mxu0 %v837_v0 }
  0x71   :  { %674 = vmatpush3.bf16.msra.mxu0 %v673_v63 }
 0x127   :  { %v175_v46 = vpop.f32.mrb[0].mxu0 }
 0x128   :  { %v176_v47 = vadd.f32 %v446_v45, %v175_v46  ;;  %v515_v48 = vpop.f32.mrb[1].mxu0 }
 0x12a   :  { %vm179_vm2 = vcmp.gt.f32.partialorder %v176_v47, 0.0  ;;  %v180_v49 = vmul.f32 0.2, %v176_v47 }
 0x12c   :  { %v181_v50 = vsel %vm179_vm2, %v176_v47, %v180_v49 }
 0x12d   :  { %v182_v51 = vmul.f32 %v181_v50, %v181_v50 }
 0x12f   :  { %549 = vmatmul.mubr.f32.vlgmr.msra.gmra.mrb[0].mxu1 %v182_v51 }
 0x130   :  { %677 = vmatpush3.bf16.msra.mxu1 %v939_v12  ;;  %618 = vmatprep.mubr.msk.f32.mxu1 %vm838_vm0, %v839_v1 }
 0x131   :  { %678 = vmatprep.subr.bf16.mxu1 %v837_v0 }
 0x134   :  { %680 = vmatpush3.bf16.msra.mxu1 %v943_v13 }
 0x135   :  { %681 = vmatprep.subr.bf16.mxu1 %v837_v0 }
 0x138   :  { %683 = vmatpush3.bf16.msra.mxu1 %v948_v17 }
 0x139   :  { %684 = vmatprep.subr.bf16.mxu1 %v837_v0 }
 0x13c   :  { %686 = vmatpush3.bf16.msra.mxu1 %v637_v20 }
 0x13d   :  { %687 = vmatprep.subr.bf16.mxu1 %v837_v0 }
 0x140   :  { %689 = vmatpush3.bf16.msra.mxu1 %v640_v23 }
 0x141   :  { %690 = vmatprep.subr.bf16.mxu1 %v837_v0 }
 0x144   :  { %692 = vmatpush3.bf16.msra.mxu1 %v643_v26 }
 0x145   :  { %693 = vmatprep.subr.bf16.mxu1 %v837_v0 }
 0x148   :  { %695 = vmatpush3.bf16.msra.mxu1 %v646_v29 }
 0x149   :  { %696 = vmatprep.subr.bf16.mxu1 %v837_v0 }
 0x14c   :  { %698 = vmatpush3.bf16.msra.mxu1 %v649_v32 }
 0x202   :  { %v249_v1 = vpop.f32.mrb[0].mxu1 }
 0x203   :  { %v253_v2 = vmul.f32 0.0625, %v249_v1  ;;  %v550_v3 = vpop.f32.mrb[1].mxu1 }
 0x205   :  { %v254_v4 = vadd.f32 1e-08, %v253_v2 }
 0x207   :  { %709 = vrsqrt.f32 %v254_v4 }
 0x211   :  { %v710_v5 = vpop.eup %709 }
 0x212   :  { %v256_v6 = vmul.f32 %v710_v5, %v181_v50 }
 0x214   :  { %584 = vmatmul.mubr.f32.vlgmr.msra.gmra.mrb[2].mxu0 %v256_v6 }
 0x2e7   :  { %v346_v8 = vpop.f32.mrb[2].mxu0 }
 0x2e8   :  { %v347_v9 = vadd.f32 %v448_v7, %v346_v8  ;;  %v585_v10 = vpop.f32.mrb[3].mxu0 }
 0x2ea   :  { %vm350_vm3 = vcmp.gt.f32.partialorder %v347_v9, 0.0  ;;  %v351_v11 = vmul.f32 0.2, %v347_v9 }
 0x2ec   :  { %v352_v12 = vsel %vm350_vm3, %v347_v9, %v351_v11 }
 0x2ed   :  { %v353_v0 = vmul.f32 %v352_v12, %v352_v12 }
 0x2ef   :  { %619 = vmatmul.mubr.f32.vlgmr.msra.gmra.mrb[2].mxu1 %v353_v0 }
 0x3c2   :  { %v420_v13 = vpop.f32.mrb[2].mxu1 }
 0x3c3   :  { %v424_v14 = vmul.f32 0.0625, %v420_v13  ;;  %v620_v15 = vpop.f32.mrb[3].mxu1 }
 0x3c5   :  { %v425_v16 = vadd.f32 1e-08, %v424_v14 }
 0x3c7   :  { %711 = vrsqrt.f32 %v425_v16 }
 0x3d1   :  { %v712_v17 = vpop.eup %711 }
 0x3d2   :  { %v427_v18 = vmul.f32 %v712_v17, %v352_v12 }
 0x3d4   :  { %428 = vst [vmem:[#allocation10] sm:$0x3] %v427_v18 }
 0x3d5   :  { %812 = shalt.err (!%p809_p8)
}
 0x3d6   :  { %s813_s25 = scalar_lea.hbm %s1003_s6, 32 }
 0x3d7   :  { %p814_p9 = scmp.ne.s32.totalorder %s1003_s6, %s813_s25  ;;  %p817_p10 = scmp.lt.u32.totalorder %s813_s25, %s1003_s6 }
 0x3d9   :  { %p819_p11 = pnand %p817_p10, %p814_p9 }
 0x3db   :  { %822 = shalt.err (!%p819_p11)
}
 0x3dc   :  { %438 = dma.vmem_to_hbm [thread:$0]  %s436_s22, 32, %s1003_s6, [#allocation4]  }
 0x3dd   :  { %829 = dma.done.wait [#allocation4], 32  }
 0x3de   :  { %830 = vsyncadd [#allocation4], 4294967264 }
 0x3df   :  { %442 = vsyncpa [#allocation3], 1 }
 0x3e0   :  { %443 = vsyncpa [#allocation6], 1 }
 0x3e1   :  { %444 = vsyncpa [#allocation9], 1 }
 0x3e2   :  { %445 = vsyncpa [#allocation4], 1 }

</bundles_post_ra>
